<compile_context>
chip_gen: v7x
topology: tpu7x:2x2x1
jax: 0.10.0
libtpu: 0.0.40
codegen_flags: <defaults>
</compile_context>

<pallas_src>
import functools

import jax
import jax.numpy as jnp
from jax.experimental import pallas as pl
from jax.experimental.pallas import tpu as pltpu


_LANE = 128


def _round_up(n, m):
    return (n + m - 1) // m * m


def _mlp_kernel(x_ref, w1_ref, b1_ref, w2_ref, b2_ref, w3_ref, b3_ref, o_ref):
    # x: (TM, D) bf16.  Weights: bf16, lane-dense (padded to 128 cols).
    # Biases: (1, 128*k) f32.  All matmuls accumulate in f32 on the MXU,
    # elementwise math stays in f32.
    x = x_ref[...]

    h1 = jnp.dot(x, w1_ref[...], preferred_element_type=jnp.float32) + b1_ref[...]
    h1 = jnp.maximum(h1, 0.0)                                  # relu(fc1)

    h2 = jnp.dot(h1.astype(w2_ref.dtype), w2_ref[...],
                 preferred_element_type=jnp.float32) + b2_ref[...]
    h2 = jnp.maximum(h2, 0.0)                                  # relu(fc2)

    z = jnp.dot(h2.astype(w3_ref.dtype), w3_ref[...],
                preferred_element_type=jnp.float32) + b3_ref[...]
    # sigmoid(z) = 1 / (1 + exp(-z)); exp and approx reciprocal both use the
    # EUP slot, so they co-issue with the surrounding vector work for free.
    o = pl.reciprocal(1.0 + jnp.exp(-z), approx=True)
    o_ref[...] = o.astype(o_ref.dtype)


@functools.partial(jax.jit, static_argnames=("tm",))
def active_wearer_forward(x, params, *, tm=1024):
    """x: (B, mic_num, h, w). Returns (B, output_dim) float32.

    tm: max batch-tile rows.  1024 rows of bf16 x (D=1024) is 2 MiB per
    input tile; double-buffered inputs + outputs + resident weights stay well
    inside the scoped-VMEM default on v5e/v6e (128 MiB physical) and v7x
    (64 MiB physical).
    """
    w1, b1, w2, b2, w3, b3 = params
    B = x.shape[0]
    D = w1.shape[0]
    out_dim = w3.shape[1]

    # ---- glue in plain JAX (fused under jit): flatten, pad lane-dense, cast ----
    x2d = x.reshape(B, -1)
    assert x2d.shape[1] == D, f"flattened input dim {x2d.shape[1]} != fc1 in {D}"

    # Batch tile: multiple of 8 sublanes; batch padded up to a multiple of it.
    TM = min(tm, _round_up(B, 8))
    B_pad = _round_up(B, TM)

    # Pad hidden/output widths to 128 lanes.  Zero-padded weight rows/cols and
    # zero bias padding cannot change the un-padded outputs (relu(0)=0 and the
    # padded columns are sliced off at the end).
    h1p = _round_up(w1.shape[1], _LANE)
    h2p = _round_up(w2.shape[1], _LANE)
    outp = _round_up(out_dim, _LANE)

    def pad2(a, r, c):
        return jnp.pad(a, ((0, r - a.shape[0]), (0, c - a.shape[1])))

    x_p = jnp.pad(x2d, ((0, B_pad - B), (0, 0))).astype(jnp.bfloat16)
    w1_p = pad2(w1, D, h1p).astype(jnp.bfloat16)
    w2_p = pad2(w2, h1p, h2p).astype(jnp.bfloat16)
    w3_p = pad2(w3, h2p, outp).astype(jnp.bfloat16)
    b1_p = jnp.pad(b1, (0, h1p - b1.shape[0])).reshape(1, -1).astype(jnp.float32)
    b2_p = jnp.pad(b2, (0, h2p - b2.shape[0])).reshape(1, -1).astype(jnp.float32)
    b3_p = jnp.pad(b3, (0, outp - b3.shape[0])).reshape(1, -1).astype(jnp.float32)

    grid = (B_pad // TM,)

    # Weights / biases: constant index_map -> stay VMEM-resident across tiles.
    resident = lambda shape: pl.BlockSpec(shape, lambda i: (0, 0))

    flops = 2 * B_pad * (D * h1p + h1p * h2p + h2p * outp)
    bytes_accessed = (
        x_p.size * 2
        + (w1_p.size + w2_p.size + w3_p.size) * 2
        + (b1_p.size + b2_p.size + b3_p.size) * 4
        + B_pad * outp * 4)
    cost = pl.CostEstimate(flops=flops,
                           transcendentals=B_pad * outp,
                           bytes_accessed=bytes_accessed)

    out = pl.pallas_call(
        _mlp_kernel,
        out_shape=jax.ShapeDtypeStruct((B_pad, outp), jnp.float32),
        grid_spec=pltpu.PrefetchScalarGridSpec(
            num_scalar_prefetch=0,
            grid=grid,
            in_specs=[
                pl.BlockSpec((TM, D), lambda i: (i, 0)),   # batch-tiled x
                resident((D, h1p)), resident((1, h1p)),
                resident((h1p, h2p)), resident((1, h2p)),
                resident((h2p, outp)), resident((1, outp)),
            ],
            out_specs=pl.BlockSpec((TM, outp), lambda i: (i, 0)),
        ),
        compiler_params=pltpu.CompilerParams(
            dimension_semantics=("parallel",)),
        cost_estimate=cost,
    )(x_p, w1_p, b1_p, w2_p, b2_p, w3_p, b3_p)

    return out[:B, :out_dim]


def init_params(input_dim, output_dim=2, key=None):
    """Deterministic synthetic init matching the nn.Linear shapes.

    Weights are stored transposed relative to PyTorch: (in_features, out_features).
    """
    mic_num, h, w = input_dim
    d_in = mic_num * h * w
    if key is None:
        key = jax.random.PRNGKey(42)
    k = jax.random.split(key, 6)

    def linear(kw, kb, fan_in, fan_out):
        bound = 1.0 / jnp.sqrt(fan_in)
        w_ = jax.random.uniform(kw, (fan_in, fan_out), jnp.float32, -bound, bound)
        b_ = jax.random.uniform(kb, (fan_out,), jnp.float32, -bound, bound)
        return w_, b_

    w1, b1 = linear(k[0], k[1], d_in, 32)
    w2, b2 = linear(k[2], k[3], 32, 64)
    w3, b3 = linear(k[4], k[5], 64, output_dim)
    return (w1, b1, w2, b2, w3, b3)


def reference_forward(x, params):
    """Pure-JAX f32 reference for correctness check."""
    w1, b1, w2, b2, w3, b3 = params
    x2d = x.reshape(x.shape[0], -1).astype(jnp.float32)
    h1 = jnp.maximum(x2d @ w1 + b1, 0.0)
    h2 = jnp.maximum(h1 @ w2 + b2, 0.0)
    return jax.nn.sigmoid(h2 @ w3 + b3)


if __name__ == "__main__":
    # Small shapes consistent with the module: batch=2, mic_num=4, h=16, w=16.
    input_dim = (4, 16, 16)
    output_dim = 2
    B = 2

    key = jax.random.PRNGKey(0)
    x = jax.random.normal(key, (B,) + input_dim, dtype=jnp.float32)
    params = init_params(input_dim, output_dim, key=jax.random.PRNGKey(42))

    out = active_wearer_forward(x, params)
    out = jax.block_until_ready(out)

    ref = reference_forward(x, params)
    assert out.shape == (B, output_dim)
    # bf16 matmul operands + approx reciprocal: loosened tolerance vs f32 ref.
    assert jnp.allclose(out, ref, atol=2e-2, rtol=2e-2), "mismatch vs reference"

    # Exercise the batch grid (grid > 1, padded final tile) at a modest size.
    B2 = 384
    x2 = jax.random.normal(jax.random.PRNGKey(1), (B2,) + input_dim, jnp.float32)
    out2 = jax.block_until_ready(active_wearer_forward(x2, params, tm=128))
    ref2 = reference_forward(x2, params)
    assert out2.shape == (B2, output_dim)
    assert jnp.allclose(out2, ref2, atol=2e-2, rtol=2e-2), "mismatch vs reference (batched)"

    print("KERNEL_OK")
</pallas_src>

<mosaic_0001>
module attributes {stable_mosaic.version = 11 : i64} {
  func.func @_mlp_kernel(%arg0: i32, %arg1: memref<8x1024xbf16, #tpu.memory_space<vmem>>, %arg2: memref<1024x128xbf16, #tpu.memory_space<vmem>>, %arg3: memref<1x128xf32, #tpu.memory_space<vmem>>, %arg4: memref<128x128xbf16, #tpu.memory_space<vmem>>, %arg5: memref<1x128xf32, #tpu.memory_space<vmem>>, %arg6: memref<128x128xbf16, #tpu.memory_space<vmem>>, %arg7: memref<1x128xf32, #tpu.memory_space<vmem>>, %arg8: memref<8x128xf32, #tpu.memory_space<vmem>>) attributes {dimension_semantics = [#tpu.dimension_semantics<parallel>], iteration_bounds = array<i64: 1>, scalar_prefetch = 0 : i64, scratch_operands = 0 : i64, tpu.core_type = #tpu.core_type<tc>, window_params = [{transform_indices = @transform_0, window_bounds = array<i64: 8, 1024>}, {pipeline_mode = #tpu.pipeline_mode<synchronous>, transform_indices = @transform_1, window_bounds = array<i64: 1024, 128>}, {pipeline_mode = #tpu.pipeline_mode<synchronous>, transform_indices = @transform_2, window_bounds = array<i64: 1, 128>}, {pipeline_mode = #tpu.pipeline_mode<synchronous>, transform_indices = @transform_3, window_bounds = array<i64: 128, 128>}, {pipeline_mode = #tpu.pipeline_mode<synchronous>, transform_indices = @transform_4, window_bounds = array<i64: 1, 128>}, {pipeline_mode = #tpu.pipeline_mode<synchronous>, transform_indices = @transform_5, window_bounds = array<i64: 128, 128>}, {pipeline_mode = #tpu.pipeline_mode<synchronous>, transform_indices = @transform_6, window_bounds = array<i64: 1, 128>}, {transform_indices = @transform_7, window_bounds = array<i64: 8, 128>}]} {
    %c0 = arith.constant 0 : index
    %c0_0 = arith.constant 0 : index
    %0 = vector.load %arg1[%c0, %c0_0] : memref<8x1024xbf16, #tpu.memory_space<vmem>>, vector<8x1024xbf16>
    %c0_1 = arith.constant 0 : index
    %c0_2 = arith.constant 0 : index
    %1 = vector.load %arg2[%c0_1, %c0_2] : memref<1024x128xbf16, #tpu.memory_space<vmem>>, vector<1024x128xbf16>
    %cst = arith.constant dense<0.000000e+00> : vector<8x128xf32>
    %2 = tpu.matmul %0, %1, %cst {dimension_numbers = #tpu.dot_dimension_numbers<[1], [0], [0], [1], [0, 0, 1, 1], [], []>} : vector<8x1024xbf16>, vector<1024x128xbf16>, vector<8x128xf32> -> vector<8x128xf32>
    %c0_3 = arith.constant 0 : index
    %c0_4 = arith.constant 0 : index
    %3 = vector.load %arg3[%c0_3, %c0_4] : memref<1x128xf32, #tpu.memory_space<vmem>>, vector<1x128xf32>
    %4 = vector.broadcast %3 : vector<1x128xf32> to vector<8x128xf32>
    %5 = arith.addf %2, %4 : vector<8x128xf32>
    %cst_5 = arith.constant 0.000000e+00 : f32
    %6 = vector.broadcast %cst_5 : f32 to vector<8x128xf32>
    %7 = arith.maximumf %5, %6 : vector<8x128xf32>
    %8 = arith.truncf %7 : vector<8x128xf32> to vector<8x128xbf16>
    %c0_6 = arith.constant 0 : index
    %c0_7 = arith.constant 0 : index
    %9 = vector.load %arg4[%c0_6, %c0_7] : memref<128x128xbf16, #tpu.memory_space<vmem>>, vector<128x128xbf16>
    %cst_8 = arith.constant dense<0.000000e+00> : vector<8x128xf32>
    %10 = tpu.matmul %8, %9, %cst_8 {dimension_numbers = #tpu.dot_dimension_numbers<[1], [0], [0], [1], [0, 0, 1, 1], [], []>} : vector<8x128xbf16>, vector<128x128xbf16>, vector<8x128xf32> -> vector<8x128xf32>
    %c0_9 = arith.constant 0 : index
    %c0_10 = arith.constant 0 : index
    %11 = vector.load %arg5[%c0_9, %c0_10] : memref<1x128xf32, #tpu.memory_space<vmem>>, vector<1x128xf32>
    %12 = vector.broadcast %11 : vector<1x128xf32> to vector<8x128xf32>
    %13 = arith.addf %10, %12 : vector<8x128xf32>
    %cst_11 = arith.constant 0.000000e+00 : f32
    %14 = vector.broadcast %cst_11 : f32 to vector<8x128xf32>
    %15 = arith.maximumf %13, %14 : vector<8x128xf32>
    %16 = arith.truncf %15 : vector<8x128xf32> to vector<8x128xbf16>
    %c0_12 = arith.constant 0 : index
    %c0_13 = arith.constant 0 : index
    %17 = vector.load %arg6[%c0_12, %c0_13] : memref<128x128xbf16, #tpu.memory_space<vmem>>, vector<128x128xbf16>
    %cst_14 = arith.constant dense<0.000000e+00> : vector<8x128xf32>
    %18 = tpu.matmul %16, %17, %cst_14 {dimension_numbers = #tpu.dot_dimension_numbers<[1], [0], [0], [1], [0, 0, 1, 1], [], []>} : vector<8x128xbf16>, vector<128x128xbf16>, vector<8x128xf32> -> vector<8x128xf32>
    %c0_15 = arith.constant 0 : index
    %c0_16 = arith.constant 0 : index
    %19 = vector.load %arg7[%c0_15, %c0_16] : memref<1x128xf32, #tpu.memory_space<vmem>>, vector<1x128xf32>
    %20 = vector.broadcast %19 : vector<1x128xf32> to vector<8x128xf32>
    %21 = arith.addf %18, %20 : vector<8x128xf32>
    %cst_17 = arith.constant 0.000000e+00 : f32
    %22 = vector.broadcast %cst_17 : f32 to vector<8x128xf32>
    %23 = arith.subf %22, %21 : vector<8x128xf32>
    %24 = math.exp %23 : vector<8x128xf32>
    %cst_18 = arith.constant 1.000000e+00 : f32
    %25 = vector.broadcast %cst_18 : f32 to vector<8x128xf32>
    %26 = arith.addf %25, %24 : vector<8x128xf32>
    %27 = tpu.reciprocal %26 {approx = true} : vector<8x128xf32> -> vector<8x128xf32>
    %c0_19 = arith.constant 0 : index
    %c0_20 = arith.constant 0 : index
    %28 = vector.load %arg8[%c0_19, %c0_20] : memref<8x128xf32, #tpu.memory_space<vmem>>, vector<8x128xf32>
    tpu.vector_store %arg8[%c0_19, %c0_20], %27 {strides = array<i32>} : memref<8x128xf32, #tpu.memory_space<vmem>>, vector<8x128xf32>,
    return
  }
  func.func @transform_0(%arg0: i32) -> (i32, i32) {
    %c0_i32 = arith.constant 0 : i32
    %c0_i32_0 = arith.constant 0 : i32
    return %arg0, %c0_i32 : i32, i32
  }
  func.func @transform_1(%arg0: i32) -> (i32, i32) {
    %c0_i32 = arith.constant 0 : i32
    %c0_i32_0 = arith.constant 0 : i32
    %c0_i32_1 = arith.constant 0 : i32
    return %c0_i32, %c0_i32_0 : i32, i32
  }
  func.func @transform_2(%arg0: i32) -> (i32, i32) {
    %c0_i32 = arith.constant 0 : i32
    %c0_i32_0 = arith.constant 0 : i32
    %c0_i32_1 = arith.constant 0 : i32
    return %c0_i32, %c0_i32_0 : i32, i32
  }
  func.func @transform_3(%arg0: i32) -> (i32, i32) {
    %c0_i32 = arith.constant 0 : i32
    %c0_i32_0 = arith.constant 0 : i32
    %c0_i32_1 = arith.constant 0 : i32
    return %c0_i32, %c0_i32_0 : i32, i32
  }
  func.func @transform_4(%arg0: i32) -> (i32, i32) {
    %c0_i32 = arith.constant 0 : i32
    %c0_i32_0 = arith.constant 0 : i32
    %c0_i32_1 = arith.constant 0 : i32
    return %c0_i32, %c0_i32_0 : i32, i32
  }
  func.func @transform_5(%arg0: i32) -> (i32, i32) {
    %c0_i32 = arith.constant 0 : i32
    %c0_i32_0 = arith.constant 0 : i32
    %c0_i32_1 = arith.constant 0 : i32
    return %c0_i32, %c0_i32_0 : i32, i32
  }
  func.func @transform_6(%arg0: i32) -> (i32, i32) {
    %c0_i32 = arith.constant 0 : i32
    %c0_i32_0 = arith.constant 0 : i32
    %c0_i32_1 = arith.constant 0 : i32
    return %c0_i32, %c0_i32_0 : i32, i32
  }
  func.func @transform_7(%arg0: i32) -> (i32, i32) {
    %c0_i32 = arith.constant 0 : i32
    %c0_i32_0 = arith.constant 0 : i32
    return %arg0, %c0_i32 : i32, i32
  }
}

</mosaic_0001>

<bundles_post_ra>
// kernel: active_wearer_forward.1
= control target key start
LH: loop header
LB: loop body
LE: loop exit
PB: predicated region body
PF: predicated region fallthrough
CT: control target
= control target key end

     0   :  { %vm1306_vm0 = vmmov 0   ;;  %s1629_s1 = inlined_call_operand.vmem [shape: bf16[1024,128], index: 1, kind: input, shape index: {}]   ;;  %s1630_s0 = inlined_call_operand.vmem [shape: bf16[8,1024], index: 0, kind: input, shape index: {}]   ;;  %s1631_s3 = inlined_call_operand.vmem [shape: bf16[128,128], index: 3, kind: input, shape index: {}]   ;;  %s1632_s5 = inlined_call_operand.vmem [shape: bf16[128,128], index: 5, kind: input, shape index: {}]   ;;  %s1633_s2 = inlined_call_operand.vmem [shape: f32[1,128], index: 2, kind: input, shape index: {}]   ;;  %s1634_s4 = inlined_call_operand.vmem [shape: f32[1,128], index: 4, kind: input, shape index: {}]   ;;  %s1635_s6 = inlined_call_operand.vmem [shape: f32[1,128], index: 6, kind: input, shape index: {}]   ;;  %s1636_s7 = inlined_call_operand.vmem [shape: f32[8,128], index: 7, kind: output, shape index: {}]  }
   0x1   :  { %v1213_v0 = vld [vmem:[%s1629_s1 + $0x40] sm:$0xff]   ;;  %v1217_v4 = vld [vmem:[%s1629_s1 + $0x48] sm:$0xff]   ;;  %v1221_v8 = vld [vmem:[%s1629_s1 + $0x50] sm:$0xff]  }
   0x2   :  { %v1214_v1 = vld [vmem:[%s1629_s1 + $0xc0] sm:$0xff]   ;;  %1065 = vmatprep.subr.bf16.mxu0 %v1213_v0  ;;  %v1218_v5 = vld [vmem:[%s1629_s1 + $0xc8] sm:$0xff]   ;;  %v1222_v9 = vld [vmem:[%s1629_s1 + $0xd0] sm:$0xff]  }
   0x3   :  { %v1215_v2 = vld [vmem:[%s1629_s1] sm:$0xff]   ;;  %1087 = vmatprep.subr.bf16.mxu1 %v1214_v1  ;;  %v1219_v6 = vld [vmem:[%s1629_s1 + $0x8] sm:$0xff]   ;;  %v1223_v10 = vld [vmem:[%s1629_s1 + $0x10] sm:$0xff]  }
   0x4   :  { %v1216_v3 = vld [vmem:[%s1629_s1 + $0x80] sm:$0xff]   ;;  %1066 = vmatpush3.bf16.msra.mxu0 %v1215_v2  ;;  %v1220_v7 = vld [vmem:[%s1629_s1 + $0x88] sm:$0xff]   ;;  %v1224_v11 = vld [vmem:[%s1629_s1 + $0x90] sm:$0xff]  }
   0x5   :  { %1088 = vmatpush3.bf16.msra.mxu1 %v1216_v3  ;;  %1067 = vmatprep.subr.bf16.mxu0 %v1217_v4  ;;  %v1225_v12 = vld [vmem:[%s1629_s1 + $0x58] sm:$0xff]   ;;  %v1229_v16 = vld [vmem:[%s1629_s1 + $0x60] sm:$0xff]   ;;  %v1233_v20 = vld [vmem:[%s1629_s1 + $0x68] sm:$0xff]  }
   0x6   :  { %1089 = vmatprep.subr.bf16.mxu1 %v1218_v5  ;;  %v1226_v13 = vld [vmem:[%s1629_s1 + $0xd8] sm:$0xff]   ;;  %v1230_v17 = vld [vmem:[%s1629_s1 + $0xe0] sm:$0xff]   ;;  %v1234_v21 = vld [vmem:[%s1629_s1 + $0xe8] sm:$0xff]  }
   0x7   :  { %v1227_v14 = vld [vmem:[%s1629_s1 + $0x18] sm:$0xff]   ;;  %v1231_v18 = vld [vmem:[%s1629_s1 + $0x20] sm:$0xff]   ;;  %v1235_v22 = vld [vmem:[%s1629_s1 + $0x28] sm:$0xff]  }
   0x8   :  { %1068 = vmatpush3.bf16.msra.mxu0 %v1219_v6  ;;  %v1228_v15 = vld [vmem:[%s1629_s1 + $0x98] sm:$0xff]   ;;  %v1232_v19 = vld [vmem:[%s1629_s1 + $0xa0] sm:$0xff]   ;;  %v1236_v23 = vld [vmem:[%s1629_s1 + $0xa8] sm:$0xff]  }
   0x9   :  { %1090 = vmatpush3.bf16.msra.mxu1 %v1220_v7  ;;  %1069 = vmatprep.subr.bf16.mxu0 %v1221_v8  ;;  %v1237_v24 = vld [vmem:[%s1629_s1 + $0x70] sm:$0xff]   ;;  %v1241_v28 = vld [vmem:[%s1629_s1 + $0x78] sm:$0xff]   ;;  %v27_v32 = vld [vmem:[%s1630_s0] sm:$0xff] }
   0xa   :  { %1091 = vmatprep.subr.bf16.mxu1 %v1222_v9  ;;  %v1238_v25 = vld [vmem:[%s1629_s1 + $0xf0] sm:$0xff]   ;;  %v1242_v29 = vld [vmem:[%s1629_s1 + $0xf8] sm:$0xff]   ;;  %v28_v33 = vld [vmem:[%s1630_s0 + $0x8] sm:$0xff]  ;;  %v975_v34 = vcombine.low %v27_v32, %v27_v32  ;;  %v976_v35 = vcombine.high %v27_v32, %v27_v32 }
   0xb   :  { %v1239_v26 = vld [vmem:[%s1629_s1 + $0x30] sm:$0xff]   ;;  %v1243_v30 = vld [vmem:[%s1629_s1 + $0x38] sm:$0xff]   ;;  %v977_v36 = vcombine.low %v28_v33, %v28_v33  ;;  %v978_v37 = vcombine.high %v28_v33, %v28_v33  ;;  %v1249_v38 = vld [vmem:[%s1629_s1 + $0x140] sm:$0xff]  }
   0xc   :  { %1070 = vmatpush3.bf16.msra.mxu0 %v1223_v10  ;;  %v1240_v27 = vld [vmem:[%s1629_s1 + $0xb0] sm:$0xff]   ;;  %v1244_v31 = vld [vmem:[%s1629_s1 + $0xb8] sm:$0xff]   ;;  %v1250_v39 = vld [vmem:[%s1629_s1 + $0x1c0] sm:$0xff]   ;;  %610 = vmatprep.mubr.bf16.mxu0 %v976_v35 }
   0xd   :  { %1092 = vmatpush3.bf16.msra.mxu1 %v1224_v11  ;;  %1071 = vmatprep.subr.bf16.mxu0 %v1225_v12  ;;  %v1251_v40 = vld [vmem:[%s1629_s1 + $0x100] sm:$0xff]   ;;  %v1253_v42 = vld [vmem:[%s1629_s1 + $0x148] sm:$0xff]   ;;  %v1257_v46 = vld [vmem:[%s1629_s1 + $0x150] sm:$0xff]   ;;  %v1305_v12 = vmov 0.0  }
   0xe   :  { %1093 = vmatprep.subr.bf16.mxu1 %v1226_v13  ;;  %650 = vmatprep.mubr.bf16.mxu1 %v978_v37  ;;  %v1252_v41 = vld [vmem:[%s1629_s1 + $0x180] sm:$0xff]   ;;  %v1254_v43 = vld [vmem:[%s1629_s1 + $0x1c8] sm:$0xff]   ;;  %v1258_v47 = vld [vmem:[%s1629_s1 + $0x1d0] sm:$0xff]  }
   0xf   :  { %v1255_v44 = vld [vmem:[%s1629_s1 + $0x108] sm:$0xff]   ;;  %v1259_v48 = vld [vmem:[%s1629_s1 + $0x110] sm:$0xff]   ;;  %v1261_v50 = vld [vmem:[%s1629_s1 + $0x158] sm:$0xff]  }
  0x10   :  { %1072 = vmatpush3.bf16.msra.mxu0 %v1227_v14  ;;  %v1256_v45 = vld [vmem:[%s1629_s1 + $0x188] sm:$0xff]   ;;  %v1260_v49 = vld [vmem:[%s1629_s1 + $0x190] sm:$0xff]   ;;  %v1262_v51 = vld [vmem:[%s1629_s1 + $0x1d8] sm:$0xff]  }
  0x11   :  { %1094 = vmatpush3.bf16.msra.mxu1 %v1228_v15  ;;  %1073 = vmatprep.subr.bf16.mxu0 %v1229_v16  ;;  %v1263_v52 = vld [vmem:[%s1629_s1 + $0x118] sm:$0xff]   ;;  %v1265_v54 = vld [vmem:[%s1629_s1 + $0x160] sm:$0xff]   ;;  %v1269_v58 = vld [vmem:[%s1629_s1 + $0x168] sm:$0xff]  }
  0x12   :  { %1095 = vmatprep.subr.bf16.mxu1 %v1230_v17  ;;  %v1264_v53 = vld [vmem:[%s1629_s1 + $0x198] sm:$0xff]   ;;  %v1266_v55 = vld [vmem:[%s1629_s1 + $0x1e0] sm:$0xff]   ;;  %v1270_v59 = vld [vmem:[%s1629_s1 + $0x1e8] sm:$0xff]  }
  0x13   :  { %v1267_v56 = vld [vmem:[%s1629_s1 + $0x120] sm:$0xff]   ;;  %v1271_v60 = vld [vmem:[%s1629_s1 + $0x128] sm:$0xff]   ;;  %v1273_v62 = vld [vmem:[%s1629_s1 + $0x170] sm:$0xff]  }
  0x14   :  { %1074 = vmatpush3.bf16.msra.mxu0 %v1231_v18  ;;  %v1268_v57 = vld [vmem:[%s1629_s1 + $0x1a0] sm:$0xff]   ;;  %v1272_v61 = vld [vmem:[%s1629_s1 + $0x1a8] sm:$0xff]   ;;  %v1274_v63 = vld [vmem:[%s1629_s1 + $0x1f0] sm:$0xff]  }
  0x15   :  { %1096 = vmatpush3.bf16.msra.mxu1 %v1232_v19  ;;  %1075 = vmatprep.subr.bf16.mxu0 %v1233_v20  ;;  %v1275_v0 = vld [vmem:[%s1629_s1 + $0x130] sm:$0xff]   ;;  %v1277_v2 = vld [vmem:[%s1629_s1 + $0x178] sm:$0xff]   ;;  %v1285_v13 = vld [vmem:[%s1631_s3] sm:$0xff]  }
  0x16   :  { %1097 = vmatprep.subr.bf16.mxu1 %v1234_v21  ;;  %v1276_v1 = vld [vmem:[%s1629_s1 + $0x1b0] sm:$0xff]   ;;  %v1278_v3 = vld [vmem:[%s1629_s1 + $0x1f8] sm:$0xff]   ;;  %v1286_v14 = vld [vmem:[%s1631_s3 + $0x8] sm:$0xff]  }
  0x17   :  { %v1279_v4 = vld [vmem:[%s1629_s1 + $0x138] sm:$0xff]   ;;  %v29_v6 = vld [vmem:[%s1630_s0 + $0x10] sm:$0xff]  ;;  %v1289_v17 = vld [vmem:[%s1631_s3 + $0x20] sm:$0xff]  }
  0x18   :  { %1076 = vmatpush3.bf16.msra.mxu0 %v1235_v22  ;;  %v1280_v5 = vld [vmem:[%s1629_s1 + $0x1b8] sm:$0xff]   ;;  %v979_v7 = vcombine.low %v29_v6, %v29_v6  ;;  %v980_v8 = vcombine.high %v29_v6, %v29_v6  ;;  %v1287_v15 = vld [vmem:[%s1631_s3 + $0x10] sm:$0xff]   ;;  %v1290_v18 = vld [vmem:[%s1631_s3 + $0x28] sm:$0xff]  }
  0x19   :  { %1098 = vmatpush3.bf16.msra.mxu1 %v1236_v23  ;;  %1077 = vmatprep.subr.bf16.mxu0 %v1237_v24  ;;  %v30_v9 = vld [vmem:[%s1630_s0 + $0x18] sm:$0xff]  ;;  %v1291_v19 = vld [vmem:[%s1631_s3 + $0x30] sm:$0xff]   ;;  %v1293_v21 = vld [vmem:[%s1632_s5] sm:$0xff]  }
  0x1a   :  { %1099 = vmatprep.subr.bf16.mxu1 %v1238_v25  ;;  %v981_v10 = vcombine.low %v30_v9, %v30_v9  ;;  %v982_v11 = vcombine.high %v30_v9, %v30_v9  ;;  %v1288_v16 = vld [vmem:[%s1631_s3 + $0x18] sm:$0xff]   ;;  %v1294_v22 = vld [vmem:[%s1632_s5 + $0x8] sm:$0xff]   ;;  %v1295_v23 = vld [vmem:[%s1632_s5 + $0x10] sm:$0xff]  }
  0x1b   :  { %v1292_v20 = vld [vmem:[%s1631_s3 + $0x38] sm:$0xff]   ;;  %v1297_v25 = vld [vmem:[%s1632_s5 + $0x20] sm:$0xff]  }
  0x1c   :  { %1078 = vmatpush3.bf16.msra.mxu0 %v1239_v26  ;;  %v1296_v24 = vld [vmem:[%s1632_s5 + $0x18] sm:$0xff]   ;;  %v1298_v26 = vld [vmem:[%s1632_s5 + $0x28] sm:$0xff]  }
  0x1d   :  { %1100 = vmatpush3.bf16.msra.mxu1 %v1240_v27  ;;  %1079 = vmatprep.subr.bf16.mxu0 %v1241_v28 }
  0x1e   :  { %1101 = vmatprep.subr.bf16.mxu1 %v1242_v29  ;;  %v974_v29 = vld [vmem:[%s1633_s2] ss:$0 sm:$0xff] }
  0x20   :  { %1080 = vmatpush3.bf16.msra.mxu0 %v1243_v30 }
  0x21   :  { %1102 = vmatpush3.bf16.msra.mxu1 %v1244_v31  ;;  %1109 = vmatprep.subr.bf16.mxu0 %v1249_v38 }
  0x22   :  { %1131 = vmatprep.subr.bf16.mxu1 %v1250_v39 }
  0x23   :  { %611 = vmatmul.mubr.bf16.vlgmr.msra.gmra.mrb[0].mxu0 %v975_v34 }
  0x24   :  { %651 = vmatmul.mubr.bf16.vlgmr.msra.gmra.mrb[0].mxu1 %v977_v36  ;;  %1110 = vmatpush3.bf16.msra.mxu0 %v1251_v40 }
  0x25   :  { %1132 = vmatpush3.bf16.msra.mxu1 %v1252_v41  ;;  %1111 = vmatprep.subr.bf16.mxu0 %v1253_v42 }
  0x26   :  { %1133 = vmatprep.subr.bf16.mxu1 %v1254_v43  ;;  %690 = vmatprep.mubr.bf16.mxu0 %v980_v8 }
  0x27   :  { %730 = vmatprep.mubr.bf16.mxu1 %v982_v11 }
  0x28   :  { %1112 = vmatpush3.bf16.msra.mxu0 %v1255_v44 }
  0x29   :  { %1134 = vmatpush3.bf16.msra.mxu1 %v1256_v45  ;;  %1113 = vmatprep.subr.bf16.mxu0 %v1257_v46 }
  0x2a   :  { %1135 = vmatprep.subr.bf16.mxu1 %v1258_v47 }
  0x2c   :  { %1114 = vmatpush3.bf16.msra.mxu0 %v1259_v48 }
  0x2d   :  { %1136 = vmatpush3.bf16.msra.mxu1 %v1260_v49  ;;  %1115 = vmatprep.subr.bf16.mxu0 %v1261_v50 }
  0x2e   :  { %1137 = vmatprep.subr.bf16.mxu1 %v1262_v51 }
  0x30   :  { %1116 = vmatpush3.bf16.msra.mxu0 %v1263_v52 }
  0x31   :  { %1138 = vmatpush3.bf16.msra.mxu1 %v1264_v53  ;;  %1117 = vmatprep.subr.bf16.mxu0 %v1265_v54  ;;  %v1299_v54 = vld [vmem:[%s1632_s5 + $0x30] sm:$0xff]  }
  0x32   :  { %1139 = vmatprep.subr.bf16.mxu1 %v1266_v55  ;;  %v1300_v55 = vld [vmem:[%s1632_s5 + $0x38] sm:$0xff]  }
  0x34   :  { %1118 = vmatpush3.bf16.msra.mxu0 %v1267_v56  ;;  %v1047_v56 = vld [vmem:[%s1634_s4] ss:$0 sm:$0xff] }
  0x35   :  { %1140 = vmatpush3.bf16.msra.mxu1 %v1268_v57  ;;  %1119 = vmatprep.subr.bf16.mxu0 %v1269_v58 }
  0x36   :  { %1141 = vmatprep.subr.bf16.mxu1 %v1270_v59 }
  0x38   :  { %1120 = vmatpush3.bf16.msra.mxu0 %v1271_v60 }
  0x39   :  { %1142 = vmatpush3.bf16.msra.mxu1 %v1272_v61  ;;  %1121 = vmatprep.subr.bf16.mxu0 %v1273_v62 }
  0x3a   :  { %1143 = vmatprep.subr.bf16.mxu1 %v1274_v63 }
  0x3c   :  { %1122 = vmatpush3.bf16.msra.mxu0 %v1275_v0  ;;  %v1056_v0 = vld [vmem:[%s1635_s6] ss:$0 sm:$0xff] }
  0x3d   :  { %1144 = vmatpush3.bf16.msra.mxu1 %v1276_v1  ;;  %1123 = vmatprep.subr.bf16.mxu0 %v1277_v2 }
  0x3e   :  { %1145 = vmatprep.subr.bf16.mxu1 %v1278_v3 }
  0x40   :  { %1124 = vmatpush3.bf16.msra.mxu0 %v1279_v4 }
  0x41   :  { %1146 = vmatpush3.bf16.msra.mxu1 %v1280_v5  ;;  %1171 = vmatprep.subr.bf16.mxu0 %v1305_v12 }
  0x42   :  { %1191 = vmatprep.subr.bf16.mxu1 %v1305_v12 }
  0x43   :  { %691 = vmatmul.mubr.bf16.vlgmr.msra.gmra.mrb[4].mxu0 %v979_v7 }
  0x44   :  { %731 = vmatmul.mubr.bf16.vlgmr.msra.gmra.mrb[4].mxu1 %v981_v10  ;;  %1172 = vmatpush3.bf16.msra.mxu0 %v1285_v13 }
  0x45   :  { %1173 = vmatprep.subr.bf16.mxu0 %v1305_v12  ;;  %1187 = vmatprep.mubr.msk.bf16.mxu0 %vm1306_vm0, %v1305_v12 }
  0x46   :  { %1207 = vmatprep.mubr.msk.bf16.mxu1 %vm1306_vm0, %v1305_v12  ;;  %1192 = vmatpush3.bf16.msra.mxu1 %v1293_v21 }
  0x47   :  { %1193 = vmatprep.subr.bf16.mxu1 %v1305_v12 }
  0x48   :  { %1174 = vmatpush3.bf16.msra.mxu0 %v1286_v14 }
  0x49   :  { %1175 = vmatprep.subr.bf16.mxu0 %v1305_v12 }
  0x4a   :  { %1194 = vmatpush3.bf16.msra.mxu1 %v1294_v22 }
  0x4b   :  { %1195 = vmatprep.subr.bf16.mxu1 %v1305_v12 }
  0x4c   :  { %1176 = vmatpush3.bf16.msra.mxu0 %v1287_v15 }
  0x4d   :  { %1177 = vmatprep.subr.bf16.mxu0 %v1305_v12 }
  0x4e   :  { %1196 = vmatpush3.bf16.msra.mxu1 %v1295_v23 }
  0x4f   :  { %1197 = vmatprep.subr.bf16.mxu1 %v1305_v12 }
  0x50   :  { %1178 = vmatpush3.bf16.msra.mxu0 %v1288_v16 }
  0x51   :  { %1179 = vmatprep.subr.bf16.mxu0 %v1305_v12 }
  0x52   :  { %1198 = vmatpush3.bf16.msra.mxu1 %v1296_v24 }
  0x53   :  { %1199 = vmatprep.subr.bf16.mxu1 %v1305_v12 }
  0x54   :  { %1180 = vmatpush3.bf16.msra.mxu0 %v1289_v17 }
  0x55   :  { %1181 = vmatprep.subr.bf16.mxu0 %v1305_v12 }
  0x56   :  { %1200 = vmatpush3.bf16.msra.mxu1 %v1297_v25 }
  0x57   :  { %1201 = vmatprep.subr.bf16.mxu1 %v1305_v12 }
  0x58   :  { %1182 = vmatpush3.bf16.msra.mxu0 %v1290_v18 }
  0x59   :  { %1183 = vmatprep.subr.bf16.mxu0 %v1305_v12 }
  0x5a   :  { %1202 = vmatpush3.bf16.msra.mxu1 %v1298_v26 }
  0x5b   :  { %1203 = vmatprep.subr.bf16.mxu1 %v1305_v12 }
  0x5c   :  { %1184 = vmatpush3.bf16.msra.mxu0 %v1291_v19 }
  0x5d   :  { %1185 = vmatprep.subr.bf16.mxu0 %v1305_v12 }
  0x5e   :  { %1204 = vmatpush3.bf16.msra.mxu1 %v1299_v54 }
  0x5f   :  { %1205 = vmatprep.subr.bf16.mxu1 %v1305_v12 }
  0x60   :  { %1186 = vmatpush3.bf16.msra.mxu0 %v1292_v20 }
  0x62   :  { %1206 = vmatpush3.bf16.msra.mxu1 %v1300_v55 }
  0xf6   :  { %v1081_v27 = vpop.f32.mrb[0].mxu0 }
  0xf7   :  { %v1103_v28 = vpop.f32.mrb[0].mxu1  ;;  %v1082_v30 = vpop.f32.mrb[1].mxu0 }
  0xf8   :  { %v1104_v31 = vpop.f32.mrb[1].mxu1  ;;  %v1083_v32 = vadd.f32 %v1082_v30, %v1081_v27  ;;  %v1084_v34 = vpop.f32.mrb[2].mxu0 }
  0xf9   :  { %v1105_v33 = vadd.f32 %v1104_v31, %v1103_v28  ;;  %v1106_v35 = vpop.f32.mrb[2].mxu1  ;;  %v1085_v36 = vpop.f32.mrb[3].mxu0 }
  0xfa   :  { %v1107_v37 = vpop.f32.mrb[3].mxu1  ;;  %v613_v38 = vadd.f32 %v1083_v32, %v974_v29 }
  0xfc   :  { %v653_v39 = vadd.f32 %v1105_v33, %v613_v38 }
 0x116   :  { %v1125_v40 = vpop.f32.mrb[4].mxu0 }
 0x117   :  { %v1147_v41 = vpop.f32.mrb[4].mxu1  ;;  %v1126_v42 = vpop.f32.mrb[5].mxu0 }
 0x118   :  { %v1148_v43 = vpop.f32.mrb[5].mxu1  ;;  %v1127_v44 = vadd.f32 %v1126_v42, %v1125_v40  ;;  %v1128_v46 = vpop.f32.mrb[6].mxu0 }
 0x119   :  { %v1149_v45 = vadd.f32 %v1148_v43, %v1147_v41  ;;  %v1150_v47 = vpop.f32.mrb[6].mxu1  ;;  %v1129_v48 = vpop.f32.mrb[7].mxu0 }
 0x11a   :  { %v1151_v49 = vpop.f32.mrb[7].mxu1  ;;  %v693_v50 = vadd.f32 %v1127_v44, %v653_v39 }
 0x11c   :  { %v733_v51 = vadd.f32 %v1149_v45, %v693_v50 }
 0x11e   :  { %v738_v52 = vmax.f32 %v733_v51, 0.0 }
 0x120   :  { %v739_v53 = vpack.c.bf16 %v738_v52, %v738_v52 }
 0x122   :  { %1188 = vmatmul.mubr.bf16.vlgmr.msra.gmra.mrb[8].mxu0 %v739_v53 }
 0x1f5   :  { %v845_v57 = vpop.f32.mrb[8].mxu0 }
 0x1f6   :  { %v846_v58 = vadd.f32 %v1047_v56, %v845_v57  ;;  %v1189_v59 = vpop.f32.mrb[9].mxu0 }
 0x1f7   :  { %v848_v60 = vpop.f32.mrb[10].mxu0 }
 0x1f8   :  { %v851_v61 = vmax.f32 %v846_v58, 0.0  ;;  %v1190_v62 = vpop.f32.mrb[11].mxu0 }
 0x1fa   :  { %v852_v63 = vpack.c.bf16 %v851_v61, %v851_v61 }
 0x1fc   :  { %1208 = vmatmul.mubr.bf16.vlgmr.msra.gmra.mrb[8].mxu1 %v852_v63 }
 0x2cf   :  { %v958_v1 = vpop.f32.mrb[8].mxu1 }
 0x2d0   :  { %v959_v2 = vadd.f32 %v1056_v0, %v958_v1  ;;  %v1209_v3 = vpop.f32.mrb[9].mxu1 }
 0x2d1   :  { %v961_v4 = vpop.f32.mrb[10].mxu1 }
 0x2d2   :  { %v964_v5 = vsub.f32 0.0, %v959_v2  ;;  %v1210_v6 = vpop.f32.mrb[11].mxu1 }
 0x2d4   :  { %v965_v7 = vmul.f32 1.442695, %v964_v5 }
 0x2d6   :  { %1301 = vpow2.f32 %v965_v7 }
 0x2e0   :  { %v1302_v8 = vpop.eup %1301 }
 0x2e1   :  { %v967_v9 = vadd.f32 1.0, %v1302_v8 }
 0x2e3   :  { %1303 = vrcp.f32 %v967_v9 }
 0x2ed   :  { %v1304_v10 = vpop.eup %1303 }
 0x2ee   :  { %969 = vst [vmem:[%s1636_s7] sm:$0xff] %v1304_v10 }

</bundles_post_ra>
